<compile_context>
chip_gen: v7x
topology: tpu7x:2x2x1
jax: 0.10.0
libtpu: 0.0.40
codegen_flags: <defaults>
</compile_context>

<pallas_src>
import jax
import jax.numpy as jnp
from jax.experimental import pallas as pl
from jax.experimental.pallas import tpu as pltpu

EPS = 1e-5  # PyTorch GroupNorm default eps


def _make_fusion_kernel(c, n_valid, n_pad):
    inv_n = 1.0 / float(n_valid)
    need_mask = n_pad != n_valid

    def kernel(x_ref, w_ref, p_ref, out_ref):
        x = x_ref[...]                                      # (2C, Np) f32

        # One packed block-diagonal matmul on the MXU (bf16 in, f32 acc):
        #   rows [0 : C)   -> gate_p  pre-activation  (Wgp @ xp)
        #   rows [C : 2C)  -> gate_i  pre-activation  (Wgi @ xi)
        #   rows [2C: 3C)  -> input_p pre-GN          (Wip @ xp)
        #   rows [3C: 4C)  -> input_i pre-GN          (Wii @ xi)
        y = jnp.dot(w_ref[...], x.astype(jnp.bfloat16),
                    preferred_element_type=jnp.float32)     # (4C, Np) f32

        # merged side parameters: [bg_p; bg_i; gamma_p; gamma_i; beta_p; beta_i]
        p = p_ref[...]                                      # (6C, 1) f32
        bg = p[:2 * c]
        gamma = p[2 * c:4 * c]
        beta = p[4 * c:]

        # --- gates: sigmoid(conv + bias), f32 on VPU/EUP --------------------
        gates = jax.nn.sigmoid(y[:2 * c] + bg)              # (2C, Np)
        gp = gates[:c]
        gi = gates[c:]

        # --- GroupNorm(num_groups=C): per-channel norm over N, both branches
        #     reduced together in one (2C, Np) slab.  The conv bias of the GN
        #     branches is dropped (exactly cancelled by the mean subtraction,
        #     valid because num_groups == C), so padded columns of z are
        #     exactly zero and sums / n_valid give the correct mean.
        #     Variance is two-pass for accuracy; padded columns masked out.
        z = y[2 * c:]                                       # (2C, Np)
        mean = jnp.sum(z, axis=-1, keepdims=True) * inv_n
        d = z - mean
        if need_mask:
            lane = jax.lax.broadcasted_iota(jnp.int32, z.shape, 1)
            d = jnp.where(lane < n_valid, d, 0.0)
        var = jnp.sum(d * d, axis=-1, keepdims=True) * inv_n
        zn = d * jax.lax.rsqrt(var + EPS) * gamma + beta
        yp = zn[:c]
        yi = zn[c:]

        # --- gated fusion, normalized by gate sum (exact reciprocal) --------
        out_ref[...] = (gp * yp + gi * yi) / (gp + gi)

    return kernel


def pack_params(params):
    """One-time parameter packing (do this at init, NOT per call)."""
    c = params["wgp"].shape[0]
    zc = jnp.zeros((c, c), jnp.float32)
    w_all = jnp.concatenate([
        jnp.concatenate([params["wgp"], zc], axis=1),       # gate_p
        jnp.concatenate([zc, params["wgi"]], axis=1),       # gate_i
        jnp.concatenate([params["wip"], zc], axis=1),       # input_p (bias dropped)
        jnp.concatenate([zc, params["wii"]], axis=1),       # input_i (bias dropped)
    ], axis=0).astype(jnp.bfloat16)                         # (4C, 2C) bf16
    p_all = jnp.concatenate([
        params["bgp"], params["bgi"],                       # gate biases
        params["gnp_gamma"], params["gni_gamma"],           # GN gamma
        params["gnp_beta"], params["gni_beta"],             # GN beta
    ], axis=0).astype(jnp.float32)                          # (6C, 1) f32
    return {"c": c, "w": jax.device_put(w_all), "p": jax.device_put(p_all)}


def fusion_fused(x_all, packed, n_valid):
    """x_all: (2C, Np) f32 (Np multiple of 128) -> fused (C, Np) f32."""
    c = packed["c"]
    n_pad = x_all.shape[-1]

    cost = pl.CostEstimate(
        flops=2 * (4 * c) * (2 * c) * n_pad,
        transcendentals=3 * c * n_pad,                      # sigmoid + rsqrt-ish
        bytes_accessed=(2 * c * n_pad * 4                   # x in
                        + 4 * c * 2 * c * 2                 # packed bf16 weights
                        + 6 * c * 4                         # merged side params
                        + c * n_pad * 4),                   # fused out
    )

    return pl.pallas_call(
        _make_fusion_kernel(c, n_valid, n_pad),
        out_shape=jax.ShapeDtypeStruct((c, n_pad), jnp.float32),
        in_specs=[
            pl.BlockSpec((2 * c, n_pad), lambda: (0, 0)),   # x_all
            pl.BlockSpec((4 * c, 2 * c), lambda: (0, 0)),   # packed W (bf16)
            pl.BlockSpec((6 * c, 1), lambda: (0, 0)),       # merged bias/gamma/beta
        ],
        out_specs=pl.BlockSpec((c, n_pad), lambda: (0, 0)),
        cost_estimate=cost,
    )(x_all, packed["w"], packed["p"])


def fusion_forward(objs, packed):
    """objs: (1, 2*C, N) f32 -> (3, C, N) f32 (== torch FusionModule.forward)."""
    _, d, n = objs.shape
    c = d // 2
    x_all = objs.reshape(2 * c, n)                          # [xp ; xi]

    # lane-dense padding of the last dim (multiple of 128)
    n_pad = pl.cdiv(n, 128) * 128
    if n_pad != n:
        x_all = jnp.pad(x_all, ((0, 0), (0, n_pad - n)))

    fused = fusion_fused(x_all, packed, n)                  # (C, Np)
    if n_pad != n:
        fused = fused[:, :n]

    # pass-through feats reuse `objs` directly; only the fused block came from
    # the kernel.  (Consumers that accept (feats, fused) can skip this concat.)
    return jnp.concatenate([objs.reshape(2, c, n), fused[None]], axis=0)


def fusion_reference(objs, params):
    """Pure-JAX f32 reference mirroring the PyTorch forward exactly."""
    _, d, n = objs.shape
    c = d // 2
    feats = objs.reshape(2, c, n)
    xp, xi = feats[0], feats[1]

    gp = jax.nn.sigmoid(params["wgp"] @ xp + params["bgp"])
    gi = jax.nn.sigmoid(params["wgi"] @ xi + params["bgi"])

    def gn(y, gamma, beta):
        mu = jnp.mean(y, axis=-1, keepdims=True)
        var = jnp.mean((y - mu) ** 2, axis=-1, keepdims=True)
        return (y - mu) / jnp.sqrt(var + EPS) * gamma + beta

    yp = gn(params["wip"] @ xp + params["bip"], params["gnp_gamma"], params["gnp_beta"])
    yi = gn(params["wii"] @ xi + params["bii"], params["gni_gamma"], params["gni_beta"])
    fused = (gp * yp + gi * yi) / (gp + gi)
    return jnp.concatenate([feats, fused[None]], axis=0)


def init_params(key, c):
    """Deterministic synthetic parameters (shapes follow nn.Conv1d / GroupNorm)."""
    ks = jax.random.split(key, 8)
    scale = 1.0 / jnp.sqrt(c)

    def w(k):  # Conv1d weight (out, in, 1) -> squeezed (out, in)
        return jax.random.uniform(k, (c, c), jnp.float32, -scale, scale)

    def b(k):
        return jax.random.uniform(k, (c, 1), jnp.float32, -scale, scale)

    return {
        "wgp": w(ks[0]), "bgp": b(ks[1]),
        "wgi": w(ks[2]), "bgi": b(ks[3]),
        "wip": w(ks[4]), "bip": b(ks[5]),
        "wii": w(ks[6]), "bii": b(ks[7]),
        # GroupNorm affine params default to ones / zeros in PyTorch
        "gnp_gamma": jnp.ones((c, 1), jnp.float32),
        "gnp_beta": jnp.zeros((c, 1), jnp.float32),
        "gni_gamma": jnp.ones((c, 1), jnp.float32),
        "gni_beta": jnp.zeros((c, 1), jnp.float32),
    }


if __name__ == "__main__":
    # appear_len == point_len == out_channels (required for the elementwise
    # mul in the original forward to broadcast) — small shapes: C=32, N=128.
    C, N = 32, 128
    key = jax.random.PRNGKey(0)
    k_obj, k_par = jax.random.split(key)
    objs = jax.random.normal(k_obj, (1, 2 * C, N), jnp.float32)
    params = init_params(k_par, C)

    packed = pack_params(params)            # one-time packing at init

    out = fusion_forward(objs, packed)
    out = jax.block_until_ready(out)
    assert out.shape == (3, C, N), out.shape

    ref = jax.block_until_ready(fusion_reference(objs, params))
    # bf16 MXU operands are the only remaining error source (exact reciprocal,
    # two-pass variance, f32 VPU/EUP math)
    err = float(jnp.max(jnp.abs(out - ref)))
    assert err < 3e-2, err

    print("KERNEL_OK")
</pallas_src>

<mosaic_0001>
module attributes {stable_mosaic.version = 11 : i64} {
  func.func @kernel(%arg0: memref<64x128xf32, #tpu.memory_space<vmem>>, %arg1: memref<128x64xbf16, #tpu.memory_space<vmem>>, %arg2: memref<192x1xf32, #tpu.memory_space<vmem>>, %arg3: memref<32x128xf32, #tpu.memory_space<vmem>>) attributes {dimension_semantics = [], scalar_prefetch = 0 : i64, scratch_operands = 0 : i64, tpu.core_type = #tpu.core_type<tc>} {
    %c0 = arith.constant 0 : index
    %c0_0 = arith.constant 0 : index
    %0 = vector.load %arg0[%c0, %c0_0] : memref<64x128xf32, #tpu.memory_space<vmem>>, vector<64x128xf32>
    %c0_1 = arith.constant 0 : index
    %c0_2 = arith.constant 0 : index
    %1 = vector.load %arg1[%c0_1, %c0_2] : memref<128x64xbf16, #tpu.memory_space<vmem>>, vector<128x64xbf16>
    %2 = arith.truncf %0 : vector<64x128xf32> to vector<64x128xbf16>
    %cst = arith.constant dense<0.000000e+00> : vector<128x128xf32>
    %3 = tpu.matmul %1, %2, %cst {dimension_numbers = #tpu.dot_dimension_numbers<[1], [0], [0], [1], [0, 0, 1, 1], [], []>} : vector<128x64xbf16>, vector<64x128xbf16>, vector<128x128xf32> -> vector<128x128xf32>
    %c0_3 = arith.constant 0 : index
    %c0_4 = arith.constant 0 : index
    %4 = vector.load %arg2[%c0_3, %c0_4] : memref<192x1xf32, #tpu.memory_space<vmem>>, vector<192x1xf32>
    %5 = vector.extract_strided_slice %4 {offsets = [0, 0], sizes = [64, 1], strides = [1, 1]} : vector<192x1xf32> to vector<64x1xf32>
    %6 = vector.extract_strided_slice %4 {offsets = [64, 0], sizes = [64, 1], strides = [1, 1]} : vector<192x1xf32> to vector<64x1xf32>
    %7 = vector.extract_strided_slice %4 {offsets = [128, 0], sizes = [64, 1], strides = [1, 1]} : vector<192x1xf32> to vector<64x1xf32>
    %8 = vector.extract_strided_slice %3 {offsets = [0, 0], sizes = [64, 128], strides = [1, 1]} : vector<128x128xf32> to vector<64x128xf32>
    %9 = vector.broadcast %5 : vector<64x1xf32> to vector<64x128xf32>
    %10 = arith.addf %8, %9 : vector<64x128xf32>
    %11 = arith.negf %10 : vector<64x128xf32>
    %12 = math.exp %11 : vector<64x128xf32>
    %cst_5 = arith.constant 1.000000e+00 : f32
    %13 = vector.broadcast %cst_5 : f32 to vector<64x128xf32>
    %14 = arith.addf %13, %12 : vector<64x128xf32>
    %15 = arith.divf %13, %14 : vector<64x128xf32>
    %16 = vector.extract_strided_slice %15 {offsets = [0, 0], sizes = [32, 128], strides = [1, 1]} : vector<64x128xf32> to vector<32x128xf32>
    %17 = vector.extract_strided_slice %15 {offsets = [32, 0], sizes = [32, 128], strides = [1, 1]} : vector<64x128xf32> to vector<32x128xf32>
    %18 = vector.extract_strided_slice %3 {offsets = [64, 0], sizes = [64, 128], strides = [1, 1]} : vector<128x128xf32> to vector<64x128xf32>
    %cst_6 = arith.constant dense<0.000000e+00> : vector<64xf32>
    %19 = vector.multi_reduction <add>, %18, %cst_6 [1] : vector<64x128xf32> to vector<64xf32>
    %20 = vector.shape_cast %19 : vector<64xf32> to vector<64x1xf32>
    %cst_7 = arith.constant 7.812500e-03 : f32
    %21 = vector.broadcast %cst_7 : f32 to vector<64x1xf32>
    %22 = arith.mulf %20, %21 : vector<64x1xf32>
    %23 = vector.broadcast %22 : vector<64x1xf32> to vector<64x128xf32>
    %24 = arith.subf %18, %23 : vector<64x128xf32>
    %25 = arith.mulf %24, %24 : vector<64x128xf32>
    %cst_8 = arith.constant dense<0.000000e+00> : vector<64xf32>
    %26 = vector.multi_reduction <add>, %25, %cst_8 [1] : vector<64x128xf32> to vector<64xf32>
    %27 = vector.shape_cast %26 : vector<64xf32> to vector<64x1xf32>
    %cst_9 = arith.constant 7.812500e-03 : f32
    %28 = vector.broadcast %cst_9 : f32 to vector<64x1xf32>
    %29 = arith.mulf %27, %28 : vector<64x1xf32>
    %cst_10 = arith.constant 9.99999974E-6 : f32
    %30 = vector.broadcast %cst_10 : f32 to vector<64x1xf32>
    %31 = arith.addf %29, %30 : vector<64x1xf32>
    %32 = math.rsqrt %31 : vector<64x1xf32>
    %33 = vector.broadcast %32 : vector<64x1xf32> to vector<64x128xf32>
    %34 = arith.mulf %24, %33 : vector<64x128xf32>
    %35 = vector.broadcast %6 : vector<64x1xf32> to vector<64x128xf32>
    %36 = arith.mulf %34, %35 : vector<64x128xf32>
    %37 = vector.broadcast %7 : vector<64x1xf32> to vector<64x128xf32>
    %38 = arith.addf %36, %37 : vector<64x128xf32>
    %39 = vector.extract_strided_slice %38 {offsets = [0, 0], sizes = [32, 128], strides = [1, 1]} : vector<64x128xf32> to vector<32x128xf32>
    %40 = vector.extract_strided_slice %38 {offsets = [32, 0], sizes = [32, 128], strides = [1, 1]} : vector<64x128xf32> to vector<32x128xf32>
    %41 = arith.mulf %16, %39 : vector<32x128xf32>
    %42 = arith.mulf %17, %40 : vector<32x128xf32>
    %43 = arith.addf %41, %42 : vector<32x128xf32>
    %44 = arith.addf %16, %17 : vector<32x128xf32>
    %45 = arith.divf %43, %44 : vector<32x128xf32>
    %c0_11 = arith.constant 0 : index
    %c0_12 = arith.constant 0 : index
    %46 = vector.load %arg3[%c0_11, %c0_12] : memref<32x128xf32, #tpu.memory_space<vmem>>, vector<32x128xf32>
    tpu.vector_store %arg3[%c0_11, %c0_12], %45 {strides = array<i32>} : memref<32x128xf32, #tpu.memory_space<vmem>>, vector<32x128xf32>,
    return
  }
}

</mosaic_0001>

<bundles_post_ra>
// kernel: tpu_custom_call.1
= control target key start
LH: loop header
LB: loop body
LE: loop exit
PB: predicated region body
PF: predicated region fallthrough
CT: control target
= control target key end

     0   :  { %v716_v5 = vmov 0   ;;  %vm84_vm0 = vcmask 523264   ;;  %s1032_s0 = inlined_call_operand.vmem [shape: f32[64,128], index: 0, kind: input, shape index: {}]   ;;  %s1033_s1 = inlined_call_operand.vmem [shape: bf16[128,64], index: 1, kind: input, shape index: {}]   ;;  %s1034_s2 = inlined_call_operand.vmem [shape: f32[192,1], index: 2, kind: input, shape index: {}]   ;;  %s1035_s3 = inlined_call_operand.hbm [shape: f32[32,128], index: 3, kind: output, shape index: {}]  }
   0x1   :  { %v16_v0 = vld [vmem:[%s1032_s0] sm:$0xff]  ;;  %v17_v1 = vld [vmem:[%s1032_s0 + $0x8] sm:$0xff]  ;;  %v18_v2 = vld [vmem:[%s1032_s0 + $0x10] sm:$0xff]  ;;  %627 = vset.pattern.permute.xlu1 %v716_v5  ;;  %626 = vset.pattern.permute.xlu0 %v716_v5 }
   0x2   :  { %v40_v3 = vpack.c.bf16 %v17_v1, %v16_v0  ;;  %v19_v4 = vld [vmem:[%s1032_s0 + $0x18] sm:$0xff]  ;;  %v20_v7 = vld [vmem:[%s1032_s0 + $0x20] sm:$0xff]  ;;  %v21_v8 = vld [vmem:[%s1032_s0 + $0x28] sm:$0xff] }
   0x3   :  { %v41_v6 = vpack.c.bf16 %v19_v4, %v18_v2  ;;  %v628_v9 = vld [vmem:[%s1033_s1 + $0x20] sm:$0xff]   ;;  %v42_v10 = vpack.c.bf16 %v21_v8, %v20_v7  ;;  %v22_v11 = vld [vmem:[%s1032_s0 + $0x30] sm:$0xff]  ;;  %v23_v12 = vld [vmem:[%s1032_s0 + $0x38] sm:$0xff] }
   0x4   :  { %614 = vmatprep.subr.bf16.mxu1 %v40_v3  ;;  %590 = vmatprep.subr.bf16.mxu0 %v40_v3  ;;  %v632_v13 = vld [vmem:[%s1033_s1] sm:$0xff]   ;;  %v43_v14 = vpack.c.bf16 %v23_v12, %v22_v11  ;;  %v207_v15 = vld [vmem:[%s1034_s2 + $0x8] sm:$0xff]  ;;  %v208_v16 = vld [vmem:[%s1034_s2 + $0x10] sm:$0xff] }
   0x5   :  { %618 = vmatpush3.bf16.msra.mxu1 %v40_v3  ;;  %591 = vmatpush3.bf16.msra.mxu0 %v40_v3  ;;  %v206_v17 = vld [vmem:[%s1034_s2] sm:$0xff]  ;;  %v629_v18 = vld [vmem:[%s1033_s1 + $0x28] sm:$0xff]   ;;  %v630_v20 = vld [vmem:[%s1033_s1 + $0x30] sm:$0xff]  }
   0x6   :  { %615 = vmatprep.subr.bf16.mxu1 %v41_v6  ;;  %606 = vmatprep.mubr.msk.bf16.mxu1 %vm84_vm0, %v628_v9  ;;  %v633_v19 = vld [vmem:[%s1033_s1 + $0x8] sm:$0xff]   ;;  %v634_v21 = vld [vmem:[%s1033_s1 + $0x10] sm:$0xff]  }
   0x7   :  { %592 = vmatprep.subr.bf16.mxu0 %v41_v6  ;;  %598 = vmatprep.mubr.msk.bf16.mxu0 %vm84_vm0, %v632_v13 }
   0x8   :  { %237 = vperm.xlu1 %627, %v207_v15   ;;  %232 = vperm.xlu0 %626, %v206_v17  }
   0x9   :  { %619 = vmatpush3.bf16.msra.mxu1 %v41_v6  ;;  %593 = vmatpush3.bf16.msra.mxu0 %v41_v6 }
   0xa   :  { %616 = vmatprep.subr.bf16.mxu1 %v42_v10  ;;  %594 = vmatprep.subr.bf16.mxu0 %v42_v10 }
   0xc   :  { %242 = vperm.xlu1 %627, %v208_v16  }
   0xd   :  { %620 = vmatpush3.bf16.msra.mxu1 %v42_v10  ;;  %595 = vmatpush3.bf16.msra.mxu0 %v42_v10 }
   0xe   :  { %617 = vmatprep.subr.bf16.mxu1 %v43_v14  ;;  %596 = vmatprep.subr.bf16.mxu0 %v43_v14 }
  0x11   :  { %621 = vmatpush3.bf16.msra.mxu1 %v43_v14  ;;  %597 = vmatpush3.bf16.msra.mxu0 %v43_v14 }
  0x12   :  { %8 = vsyncpa [#allocation3], 0  ;;  %v209_v22 = vld [vmem:[%s1034_s2 + $0x18] sm:$0xff]  ;;  %v214_v23 = vld [vmem:[%s1034_s2 + $0x40] sm:$0xff] }
  0x13   :  { %247 = vperm.xlu1 %627, %v209_v22   ;;  %416 = vperm.xlu0 %626, %v214_v23   ;;  %v210_v24 = vld [vmem:[%s1034_s2 + $0x20] sm:$0xff]  ;;  %v217_v25 = vld [vmem:[%s1034_s2 + $0x58] sm:$0xff]  ;;  %v211_v28 = vld [vmem:[%s1034_s2 + $0x28] sm:$0xff] }
  0x14   :  { %607 = vmatmul.mubr.msk.bf16.vlgmr.msra.gmra.mrb[0].mxu1 %vm84_vm0, %v629_v18  ;;  %599 = vmatmul.mubr.msk.bf16.vlgmr.msra.gmra.mrb[0].mxu0 %vm84_vm0, %v633_v19  ;;  %v631_v26 = vld [vmem:[%s1033_s1 + $0x38] sm:$0xff]   ;;  %v219_v29 = vld [vmem:[%s1034_s2 + $0x68] sm:$0xff]  ;;  %v212_v30 = vld [vmem:[%s1034_s2 + $0x30] sm:$0xff] }
  0x15   :  { %610 = vmatprep.mubr.msk.bf16.mxu1 %vm84_vm0, %v630_v20  ;;  %602 = vmatprep.mubr.msk.bf16.mxu0 %vm84_vm0, %v634_v21  ;;  %v635_v27 = vld [vmem:[%s1033_s1 + $0x18] sm:$0xff]   ;;  %v215_v33 = vld [vmem:[%s1034_s2 + $0x48] sm:$0xff]  ;;  %v216_v34 = vld [vmem:[%s1034_s2 + $0x50] sm:$0xff] }
  0x16   :  { %v221_v31 = vld [vmem:[%s1034_s2 + $0x78] sm:$0xff]  ;;  %v218_v35 = vld [vmem:[%s1034_s2 + $0x60] sm:$0xff]  ;;  %v220_v36 = vld [vmem:[%s1034_s2 + $0x70] sm:$0xff] }
  0x17   :  { %252 = vperm.xlu1 %627, %v210_v24   ;;  %431 = vperm.xlu0 %626, %v217_v25   ;;  %v213_v32 = vld [vmem:[%s1034_s2 + $0x38] sm:$0xff]  ;;  %v222_v37 = vld [vmem:[%s1034_s2 + $0x80] sm:$0xff] }
  0x1b   :  { %257 = vperm.xlu1 %627, %v211_v28   ;;  %441 = vperm.xlu0 %626, %v219_v29  }
  0x1c   :  { %611 = vmatmul.mubr.msk.bf16.gmra.mrb[4].mxu1 %vm84_vm0, %v631_v26  ;;  %603 = vmatmul.mubr.msk.bf16.gmra.mrb[4].mxu0 %vm84_vm0, %v635_v27 }
  0x1f   :  { %262 = vperm.xlu1 %627, %v212_v30   ;;  %451 = vperm.xlu0 %626, %v221_v31   ;;  %v224_v30 = vld [vmem:[%s1034_s2 + $0x90] sm:$0xff] }
  0x23   :  { %267 = vperm.xlu1 %627, %v213_v32  }
  0x27   :  { %421 = vperm.xlu1 %627, %v215_v33   ;;  %v223_v33 = vld [vmem:[%s1034_s2 + $0x88] sm:$0xff] }
  0x2b   :  { %426 = vperm.xlu1 %627, %v216_v34   ;;  %v226_v34 = vld [vmem:[%s1034_s2 + $0xa0] sm:$0xff] }
  0x2f   :  { %436 = vperm.xlu1 %627, %v218_v35  }
  0x33   :  { %446 = vperm.xlu1 %627, %v220_v36  }
  0x37   :  { %464 = vperm.xlu1 %627, %v222_v37  }
  0x87   :  { %v238_v38 = vpop.permute.xlu1 %237  ;;  %v233_v44 = vpop.permute.xlu0 %232 }
  0x8b   :  { %v243_v39 = vpop.permute.xlu1 %242 }
  0x92   :  { %v248_v40 = vpop.permute.xlu1 %247 }
  0x96   :  { %v253_v41 = vpop.permute.xlu1 %252 }
  0x9a   :  { %v258_v42 = vpop.permute.xlu1 %257 }
  0x9e   :  { %v263_v43 = vpop.permute.xlu1 %262 }
  0xa2   :  { %v268_v61 = vpop.permute.xlu1 %267 }
  0xe7   :  { %v847_v45 = vpop.f32.mrb[0].mxu1  ;;  %v600_v46 = vpop.f32.mrb[0].mxu0 }
  0xe8   :  { %330 = vadd.xlane.f32.xlu1 %v847_v45  ;;  %v850_v47 = vpop.f32.mrb[1].mxu1  ;;  %v272_v48 = vadd.f32 %v600_v46, %v243_v39  ;;  %v143_v49 = vpop.f32.mrb[1].mxu0  ;;  %v225_v39 = vld [vmem:[%s1034_s2 + $0x98] sm:$0xff] }
  0xe9   :  { %326 = vadd.xlane.f32.xlu0 %v850_v47  ;;  %v853_v50 = vpop.f32.mrb[2].mxu1  ;;  %v601_v51 = vpop.f32.mrb[2].mxu0  ;;  %v270_v52 = vadd.f32 %v233_v44, %v143_v49 }
  0xea   :  { %v855_v53 = vpop.f32.mrb[3].mxu1  ;;  %v572_v54 = vmul.f32 -1.442695, %v272_v48  ;;  %v273_v55 = vadd.f32 %v601_v51, %v248_v40  ;;  %v146_v56 = vpop.f32.mrb[3].mxu0  ;;  %v227_v48 = vld [vmem:[%s1034_s2 + $0xa8] sm:$0xff] }
  0xeb   :  { %v271_v57 = vadd.f32 %v238_v38, %v146_v56  ;;  %v570_v58 = vmul.f32 -1.442695, %v270_v52  ;;  %v918_v49 = vpop.permute.xlu1 %421  ;;  %v922_v52 = vpop.permute.xlu0 %416 }
  0xec   :  { %332 = vadd.xlane.f32.xlu1 %v853_v50  ;;  %636 = vpow2.f32 %v572_v54  ;;  %v573_v59 = vmul.f32 -1.442695, %v273_v55 }
  0xed   :  { %328 = vadd.xlane.f32.xlu0 %v855_v53  ;;  %v571_v60 = vmul.f32 -1.442695, %v271_v57  ;;  %638 = vpow2.f32 %v570_v58 }
  0xee   :  { %640 = vpow2.f32 %v573_v59 }
  0xef   :  { %v859_v62 = vpop.f32.mrb[4].mxu1  ;;  %642 = vpow2.f32 %v571_v60  ;;  %v604_v63 = vpop.f32.mrb[4].mxu0 }
  0xf0   :  { %v861_v0 = vpop.f32.mrb[5].mxu1  ;;  %v276_v1 = vadd.f32 %v604_v63, %v263_v43  ;;  %v159_v2 = vpop.f32.mrb[5].mxu0 }
  0xf1   :  { %338 = vadd.xlane.f32.xlu0 %v859_v62  ;;  %v864_v3 = vpop.f32.mrb[6].mxu1  ;;  %v274_v4 = vadd.f32 %v253_v41, %v159_v2  ;;  %v605_v5 = vpop.f32.mrb[6].mxu0 }
  0xf2   :  { %340 = vadd.xlane.f32.xlu1 %v864_v3  ;;  %v867_v6 = vpop.f32.mrb[7].mxu1  ;;  %v576_v7 = vmul.f32 -1.442695, %v276_v1  ;;  %v277_v8 = vadd.f32 %v605_v5, %v268_v61  ;;  %v162_v9 = vpop.f32.mrb[7].mxu0 }
  0xf3   :  { %v574_v10 = vmul.f32 -1.442695, %v274_v4  ;;  %v275_v11 = vadd.f32 %v258_v42, %v162_v9  ;;  %v920_v51 = vpop.permute.xlu1 %426  ;;  %v926_v55 = vpop.permute.xlu0 %431 }
  0xf4   :  { %644 = vpow2.f32 %v576_v7  ;;  %v577_v12 = vmul.f32 -1.442695, %v277_v8 }
  0xf5   :  { %334 = vadd.xlane.f32.xlu0 %v861_v0  ;;  %646 = vpow2.f32 %v574_v10  ;;  %v575_v13 = vmul.f32 -1.442695, %v275_v11 }
  0xf6   :  { %v637_v14 = vpop.eup %636  ;;  %336 = vadd.xlane.f32.xlu1 %v867_v6  ;;  %648 = vpow2.f32 %v577_v12 }
  0xf7   :  { %v639_v15 = vpop.eup %638  ;;  %650 = vpow2.f32 %v575_v13  ;;  %v304_v18 = vadd.f32 1.0, %v637_v14  ;;  %v924_v54 = vpop.permute.xlu1 %436 }
  0xf8   :  { %v641_v16 = vpop.eup %640  ;;  %v302_v19 = vadd.f32 1.0, %v639_v15  ;;  %v930_v57 = vpop.permute.xlu0 %441 }
  0xf9   :  { %v643_v17 = vpop.eup %642  ;;  %v305_v20 = vadd.f32 1.0, %v641_v16  ;;  %652 = vrcp.f32 %v304_v18 }
  0xfa   :  { %v303_v21 = vadd.f32 1.0, %v643_v17  ;;  %654 = vrcp.f32 %v302_v19 }
  0xfb   :  { %656 = vrcp.f32 %v305_v20  ;;  %v928_v56 = vpop.permute.xlu1 %446 }
  0xfc   :  { %658 = vrcp.f32 %v303_v21  ;;  %v934_v59 = vpop.permute.xlu0 %451 }
  0xfe   :  { %v645_v22 = vpop.eup %644 }
  0xff   :  { %v647_v23 = vpop.eup %646  ;;  %v308_v24 = vadd.f32 1.0, %v645_v22  ;;  %v932_v58 = vpop.permute.xlu1 %464 }
 0x100   :  { %v649_v25 = vpop.eup %648  ;;  %v306_v26 = vadd.f32 1.0, %v647_v23 }
 0x101   :  { %v651_v27 = vpop.eup %650  ;;  %660 = vrcp.f32 %v308_v24  ;;  %v309_v28 = vadd.f32 1.0, %v649_v25 }
 0x102   :  { %662 = vrcp.f32 %v306_v26  ;;  %v307_v29 = vadd.f32 1.0, %v651_v27  ;;  %v228_v26 = vld [vmem:[%s1034_s2 + $0xb0] sm:$0xff] }
 0x103   :  { %664 = vrcp.f32 %v309_v28  ;;  %v874_v31 = vpop.eup %652 }
 0x104   :  { %666 = vrcp.f32 %v307_v29  ;;  %v876_v32 = vpop.eup %654 }
 0x105   :  { %v884_v35 = vpop.eup %656 }
 0x106   :  { %v886_v36 = vpop.eup %658 }
 0x107   :  { %474 = vperm.xlu1 %627, %v224_v30  }
 0x10b   :  { %v888_v37 = vpop.eup %660  ;;  %469 = vperm.xlu0 %626, %v223_v33   ;;  %484 = vperm.xlu1 %627, %v226_v34  }
 0x10c   :  { %v890_v38 = vpop.eup %662  ;;  %v897_v40 = vadd.f32 %v888_v37, %v874_v31 }
 0x10d   :  { %v899_v41 = vpop.eup %664  ;;  %v903_v42 = vadd.f32 %v890_v38, %v876_v32 }
 0x10e   :  { %v905_v43 = vpop.eup %666  ;;  %v909_v44 = vadd.f32 %v899_v41, %v884_v35 }
 0x10f   :  { %479 = vperm.xlu0 %626, %v225_v39   ;;  %v913_v46 = vadd.f32 %v905_v43, %v886_v36 }
 0x113   :  { %489 = vperm.xlu0 %626, %v227_v48  }
 0x175   :  { %v331_v60 = vpop.xlane.xlu1 %330 }
 0x176   :  { %v344_v61 = vmul.f32 0.0078125, %v331_v60  ;;  %v327_v63 = vpop.xlane.xlu0 %326 }
 0x177   :  { %v342_v1 = vmul.f32 0.0078125, %v327_v63 }
 0x178   :  { %v937_v2 = vsub.f32 %v847_v45, %v344_v61 }
 0x179   :  { %v940_v4 = vsub.f32 %v850_v47, %v342_v1  ;;  %v333_v5 = vpop.xlane.xlu1 %332 }
 0x17a   :  { %v345_v7 = vmul.f32 0.0078125, %v333_v5  ;;  %v329_v8 = vpop.xlane.xlu0 %328  ;;  %v360_v9 = vmul.f32 %v937_v2, %v937_v2 }
 0x17b   :  { %v343_v10 = vmul.f32 0.0078125, %v329_v8  ;;  %v358_v11 = vmul.f32 %v940_v4, %v940_v4 }
 0x17c   :  { %v947_v12 = vsub.f32 %v853_v50, %v345_v7  ;;  %370 = vadd.xlane.f32.xlu0 %v360_v9 }
 0x17d   :  { %v950_v45 = vsub.f32 %v855_v53, %v343_v10  ;;  %366 = vadd.xlane.f32.xlu1 %v358_v11 }
 0x17e   :  { %v339_v47 = vpop.xlane.xlu0 %338  ;;  %v361_v13 = vmul.f32 %v947_v12, %v947_v12 }
 0x17f   :  { %v348_v14 = vmul.f32 0.0078125, %v339_v47  ;;  %v341_v15 = vpop.xlane.xlu1 %340  ;;  %v359_v16 = vmul.f32 %v950_v45, %v950_v45 }
 0x180   :  { %v349_v17 = vmul.f32 0.0078125, %v341_v15 }
 0x181   :  { %v957_v18 = vsub.f32 %v859_v62, %v348_v14  ;;  %368 = vadd.xlane.f32.xlu0 %v359_v16  ;;  %372 = vadd.xlane.f32.xlu1 %v361_v13 }
 0x182   :  { %v960_v50 = vsub.f32 %v864_v3, %v349_v17  ;;  %v335_v53 = vpop.xlane.xlu0 %334 }
 0x183   :  { %v346_v19 = vmul.f32 0.0078125, %v335_v53  ;;  %v337_v20 = vpop.xlane.xlu1 %336  ;;  %v364_v21 = vmul.f32 %v957_v18, %v957_v18 }
 0x184   :  { %v347_v22 = vmul.f32 0.0078125, %v337_v20  ;;  %v365_v23 = vmul.f32 %v960_v50, %v960_v50 }
 0x185   :  { %v967_v24 = vsub.f32 %v861_v0, %v346_v19  ;;  %378 = vadd.xlane.f32.xlu0 %v364_v21  ;;  %v229_v0 = vld [vmem:[%s1034_s2 + $0xb8] sm:$0xff]  ;;  %s717_s2 = smov [#allocation2]  }
 0x186   :  { %v970_v62 = vsub.f32 %v867_v6, %v347_v22  ;;  %380 = vadd.xlane.f32.xlu1 %v365_v23  ;;  %s543_s7 = sshll.u32 %s717_s2, 4  ;;  %s544_s7 = int_to_ptr.vmem [resolvable:$true] %s543_s7 }
 0x187   :  { %v362_v3 = vmul.f32 %v967_v24, %v967_v24  ;;  %v475_v28 = vpop.permute.xlu1 %474  ;;  %s692_s1 = scalar_lea.vmem %s544_s7, 512  ;;  %p697_p1 = scmp.lt.s32.totalorder %s544_s7, %s544_s7 }
 0x188   :  { %v363_v25 = vmul.f32 %v970_v62, %v970_v62  ;;  %p693_p0 = scmp.ne.s32.totalorder %s544_s7, %s692_s1  ;;  %p698_p2 = scmp.lt.s32.totalorder %s692_s1, %s692_s1 }
 0x189   :  { %374 = vadd.xlane.f32.xlu0 %v362_v3 }
 0x18a   :  { %376 = vadd.xlane.f32.xlu1 %v363_v25  ;;  %v982_v6 = vpop.permute.xlu0 %469  ;;  %p699_p3 = por %p698_p2, %p697_p1 }
 0x18b   :  { %v986_v30 = vpop.permute.xlu1 %484 }
 0x18c   :  { %p700_p4 = pnand %p699_p3, %p693_p0 }
 0x18e   :  { %v480_v27 = vpop.permute.xlu0 %479 }
 0x192   :  { %v984_v29 = vpop.permute.xlu0 %489 }
 0x19b   :  { %494 = vperm.xlu1 %627, %v228_v26  }
 0x19f   :  { %499 = vperm.xlu0 %626, %v229_v0  }
 0x209   :  { %v371_v33 = vpop.xlane.xlu0 %370 }
 0x20a   :  { %v384_v34 = vmul.f32 0.0078125, %v371_v33  ;;  %v367_v39 = vpop.xlane.xlu1 %366 }
 0x20b   :  { %v382_v48 = vmul.f32 0.0078125, %v367_v39 }
 0x20c   :  { %v392_v60 = vadd.f32 1e-05, %v384_v34 }
 0x20d   :  { %v390_v61 = vadd.f32 1e-05, %v382_v48 }
 0x20e   :  { %v369_v63 = vpop.xlane.xlu0 %368  ;;  %v373_v1 = vpop.xlane.xlu1 %372  ;;  %668 = vrsqrt.f32 %v392_v60 }
 0x20f   :  { %v383_v5 = vmul.f32 0.0078125, %v369_v63  ;;  %v385_v7 = vmul.f32 0.0078125, %v373_v1  ;;  %670 = vrsqrt.f32 %v390_v61 }
 0x211   :  { %v391_v8 = vadd.f32 1e-05, %v383_v5  ;;  %v393_v9 = vadd.f32 1e-05, %v385_v7 }
 0x212   :  { %v379_v10 = vpop.xlane.xlu0 %378 }
 0x213   :  { %672 = vrsqrt.f32 %v391_v8  ;;  %v388_v11 = vmul.f32 0.0078125, %v379_v10  ;;  %v381_v47 = vpop.xlane.xlu1 %380 }
 0x214   :  { %674 = vrsqrt.f32 %v393_v9  ;;  %v389_v13 = vmul.f32 0.0078125, %v381_v47 }
 0x215   :  { %v396_v14 = vadd.f32 1e-05, %v388_v11 }
 0x216   :  { %v397_v15 = vadd.f32 1e-05, %v389_v13  ;;  %v375_v16 = vpop.xlane.xlu0 %374 }
 0x217   :  { %676 = vrsqrt.f32 %v396_v14  ;;  %v386_v17 = vmul.f32 0.0078125, %v375_v16  ;;  %v377_v53 = vpop.xlane.xlu1 %376 }
 0x218   :  { %678 = vrsqrt.f32 %v397_v15  ;;  %v387_v19 = vmul.f32 0.0078125, %v377_v53  ;;  %v669_v20 = vpop.eup %668 }
 0x219   :  { %v394_v21 = vadd.f32 1e-05, %v386_v17  ;;  %v671_v23 = vpop.eup %670  ;;  %v408_v3 = vmul.f32 %v669_v20, %v937_v2 }
 0x21a   :  { %v395_v22 = vadd.f32 1e-05, %v387_v19  ;;  %v406_v33 = vmul.f32 %v671_v23, %v940_v4 }
 0x21b   :  { %680 = vrsqrt.f32 %v394_v21  ;;  %v456_v34 = vmul.f32 %v920_v51, %v408_v3 }
 0x21c   :  { %682 = vrsqrt.f32 %v395_v22 }
 0x21d   :  { %v673_v25 = vpop.eup %672  ;;  %684 = vrcp.f32 %v897_v40  ;;  %v504_v1 = vadd.f32 %v475_v28, %v456_v34 }
 0x21e   :  { %v675_v26 = vpop.eup %674  ;;  %v407_v48 = vmul.f32 %v673_v25, %v950_v45  ;;  %686 = vrcp.f32 %v909_v44  ;;  %v495_v45 = vpop.permute.xlu1 %494 }
 0x21f   :  { %v409_v0 = vmul.f32 %v675_v26, %v947_v12  ;;  %v454_v12 = vmul.f32 %v922_v52, %v406_v33  ;;  %688 = vrcp.f32 %v903_v42 }
 0x220   :  { %v455_v40 = vmul.f32 %v918_v49, %v407_v48  ;;  %690 = vrcp.f32 %v913_v46  ;;  %v512_v49 = vmul.f32 %v874_v31, %v504_v1 }
 0x221   :  { %v677_v39 = vpop.eup %676  ;;  %v457_v60 = vmul.f32 %v926_v55, %v409_v0  ;;  %v502_v28 = vadd.f32 %v932_v58, %v454_v12 }
 0x222   :  { %v679_v61 = vpop.eup %678  ;;  %v412_v2 = vmul.f32 %v677_v39, %v957_v18 }
 0x223   :  { %v413_v63 = vmul.f32 %v679_v61, %v960_v50  ;;  %v505_v5 = vadd.f32 %v480_v27, %v457_v60  ;;  %v500_v50 = vpop.permute.xlu0 %499  ;;  %v510_v31 = vmul.f32 %v876_v32, %v502_v28 }
 0x224   :  { %v460_v4 = vmul.f32 %v928_v56, %v412_v2 }
 0x225   :  { %v681_v51 = vpop.eup %680  ;;  %v461_v55 = vmul.f32 %v934_v59, %v413_v63  ;;  %v503_v59 = vadd.f32 %v982_v6, %v455_v40  ;;  %v513_v46 = vmul.f32 %v884_v35, %v505_v5 }
 0x226   :  { %v683_v7 = vpop.eup %682  ;;  %v410_v44 = vmul.f32 %v681_v51, %v967_v24  ;;  %v508_v18 = vadd.f32 %v495_v45, %v460_v4 }
 0x227   :  { %v411_v52 = vmul.f32 %v683_v7, %v970_v62  ;;  %v509_v56 = vadd.f32 %v500_v50, %v461_v55  ;;  %v685_v10 = vpop.eup %684  ;;  %v511_v6 = vmul.f32 %v886_v36, %v503_v59 }
 0x228   :  { %v458_v42 = vmul.f32 %v924_v54, %v410_v44  ;;  %v516_v8 = vmul.f32 %v888_v37, %v508_v18  ;;  %v687_v54 = vpop.eup %686 }
 0x229   :  { %v459_v27 = vmul.f32 %v930_v57, %v411_v52  ;;  %v517_v24 = vmul.f32 %v899_v41, %v509_v56 }
 0x22a   :  { %v506_v9 = vadd.f32 %v986_v30, %v458_v42  ;;  %v520_v62 = vadd.f32 %v516_v8, %v512_v49  ;;  %v689_v30 = vpop.eup %688 }
 0x22b   :  { %v507_v58 = vadd.f32 %v984_v29, %v459_v27  ;;  %v521_v11 = vadd.f32 %v517_v24, %v513_v46  ;;  %v691_v29 = vpop.eup %690 }
 0x22c   :  { %v514_v37 = vmul.f32 %v890_v38, %v506_v9  ;;  %v531_v47 = vmul.f32 %v685_v10, %v520_v62 }
 0x22d   :  { %v515_v57 = vmul.f32 %v905_v43, %v507_v58  ;;  %v533_v35 = vmul.f32 %v687_v54, %v521_v11 }
 0x22e   :  { %536 = vst [vmem:[#allocation2 + $0x10] sm:$0xff] %v531_v47  ;;  %v518_v41 = vadd.f32 %v514_v37, %v510_v31 }
 0x22f   :  { %537 = vst [vmem:[#allocation2 + $0x18] sm:$0xff] %v533_v35  ;;  %v519_v13 = vadd.f32 %v515_v57, %v511_v6 }
 0x230   :  { %v527_v14 = vmul.f32 %v689_v30, %v518_v41 }
 0x231   :  { %v529_v15 = vmul.f32 %v691_v29, %v519_v13 }
 0x232   :  { %534 = vst [vmem:[#allocation2] sm:$0xff] %v527_v14 }
 0x233   :  { %535 = vst [vmem:[#allocation2 + $0x8] sm:$0xff] %v529_v15 }
 0x234   :  { %703 = shalt.err (!%p700_p4)
}
 0x235   :  { %s704_s10 = scalar_lea.hbm %s1035_s3, 512 }
 0x236   :  { %p705_p5 = scmp.ne.s32.totalorder %s1035_s3, %s704_s10  ;;  %p708_p6 = scmp.lt.u32.totalorder %s704_s10, %s1035_s3 }
 0x238   :  { %p710_p7 = pnand %p708_p6, %p705_p5 }
 0x23a   :  { %713 = shalt.err (!%p710_p7)
}
 0x23b   :  { %s718_s15 = smov 128   ;;  %s719_s16 = smov 8  }
 0x23c   :  { %549 = dma.vmem_to_hbm [thread:$0]  %s544_s7, 512, %s1035_s3, [#allocation3], %s718_s15, %s718_s15, %s719_s16  }
 0x23d   :  { %714 = dma.done.wait [#allocation3], 512  }
 0x23e   :  { %715 = vsyncadd [#allocation3], 4294966784 }
 0x23f   :  { %553 = vsyncpa [#allocation3], 1 }

</bundles_post_ra>
